<compile_context>
chip_gen: v6e
topology: v6e:2x2x1
jax: 0.10.0
libtpu: 0.0.40
codegen_flags: <defaults>
</compile_context>

<pallas_src>
import jax
import jax.numpy as jnp
from jax.experimental import pallas as pl
from jax.experimental.pallas import tpu as pltpu

N_ACTOR = 128
NUM_PRED_POINTS = 30
D_IN = 2 * N_ACTOR            # 256
D_HID = N_ACTOR               # 128
D_OUT = 2 * NUM_PRED_POINTS   # 60
D_OUT_PAD = 128               # lane-dense padded output width
LN_EPS = 1e-5                 # PyTorch LayerNorm default
MAX_TILE_M = 1024             # big-tile size for large M (well inside VMEM)
SINGLE_TILE_M = 512           # below this, one tile (no split on 1-TC chips)


def _traj_pred_kernel(x_ref, wa_ref, vecs_ref, w2_ref, out_ref):
    # x: (TM, 256) f32 row-tile of the flattened (B*N, D_IN) actors.
    # Cast to bf16 inside the kernel (one cheap VPU pass; VALU has slack).
    x = x_ref[...].astype(wa_ref.dtype)

    # Packed bias / LN vectors: rows 0..4 = b1, bs, gamma, beta, b2_pad.
    vecs = vecs_ref[...]                      # (8, 128) f32
    b1 = vecs[0:1, :]
    bs = vecs[1:2, :]
    gamma = vecs[2:3, :]
    beta = vecs[3:4, :]
    b2 = vecs[4:5, :]

    # Fused main + shortcut projection: one (TM,256)@(256,256) MXU pass, f32 acc.
    h_all = jnp.dot(x, wa_ref[...], preferred_element_type=jnp.float32)
    h = h_all[:, :D_HID] + b1                 # main branch pre-norm
    res = h_all[:, D_HID:] + bs               # residual shortcut

    # LayerNorm (biased variance, matches torch.nn.LayerNorm) + ReLU, in f32.
    mu = jnp.mean(h, axis=-1, keepdims=True)
    var = jnp.mean(jnp.square(h - mu), axis=-1, keepdims=True)
    hn = (h - mu) * jax.lax.rsqrt(var + LN_EPS)
    hn = jnp.maximum(hn * gamma + beta, 0.0)

    feat = (hn + res).astype(w2_ref.dtype)    # (TM, 128) bf16 for the MXU

    # Final Linear(128 -> 128 padded); lane-dense, unmasked store.
    out = jnp.dot(feat, w2_ref[...], preferred_element_type=jnp.float32) + b2
    out_ref[...] = out.astype(out_ref.dtype)


def _choose_row_tile(M):
    """Pick the M-axis (row) tile.

    - Small M (<= 512): one tile covering the whole problem; splitting only
      adds per-grid-step overhead on single-TC chips (v5e/v6e) and the tiles
      would be too small (< 256 rows) to be worth sharding on v7x.
    - Large M: at least 2 'parallel' grid steps (both v7x TensorCores busy),
      capped at MAX_TILE_M so per-step HBM traffic dominates the fixed
      per-step overhead while staying far inside scoped VMEM on every gen.
    x block is f32 (cast happens in-kernel), so 8-row alignment suffices.
    """
    if M <= SINGLE_TILE_M:
        return max(8, ((M + 7) // 8) * 8)
    half = -(-M // 2)                 # ceil(M / 2)
    half = ((half + 7) // 8) * 8      # round up to sublane multiple of 8
    return min(MAX_TILE_M, half)


def traj_predicter_forward(actors, params, matmul_dtype=jnp.bfloat16):
    """actors: (B, N, D_IN) float32. Returns {'reg': (B, N, 30, 2) float32}.

    The original module returns out['reg'] as a per-batch list; here the
    batched array is returned (out['reg'][b] of the PyTorch module == reg[b]).
    """
    B, N, d_in = actors.shape
    assert d_in == D_IN
    w1, b1, g, beta, ws, bs, w2, b2 = params

    # --- parameter packing (host/XLA side, done once) --------------------
    wa = jnp.concatenate([w1, ws], axis=1).astype(matmul_dtype)        # (256, 256)
    w2p = jnp.zeros((D_HID, D_OUT_PAD), jnp.float32)
    w2p = w2p.at[:, :D_OUT].set(w2).astype(matmul_dtype)               # (128, 128)
    b2p = jnp.zeros((D_OUT_PAD,), jnp.float32).at[:D_OUT].set(b2.reshape(-1))
    zero_row = jnp.zeros((D_HID,), jnp.float32)
    vecs = jnp.stack(
        [b1.reshape(-1), bs.reshape(-1), g.reshape(-1), beta.reshape(-1),
         b2p, zero_row, zero_row, zero_row],
        axis=0).astype(jnp.float32)                                    # (8, 128)

    # --- flatten (B, N) -> M; NO padding, NO wrapper-side cast -----------
    M = B * N
    tile_m = _choose_row_tile(M)
    num_tiles = pl.cdiv(M, tile_m)       # ragged last block handled by Pallas

    x = actors.reshape(M, D_IN)          # stays f32; cast happens in-kernel

    cost = pl.CostEstimate(
        flops=2 * M * (D_IN * 2 * D_HID + D_HID * D_OUT_PAD),
        transcendentals=M,                           # one rsqrt per row
        bytes_accessed=(M * D_IN * 4                 # x (f32)
                        + D_IN * 2 * D_HID * 2       # fused weight (bf16)
                        + D_HID * D_OUT_PAD * 2      # w2 (bf16)
                        + 8 * D_HID * 4              # packed vectors (f32)
                        + M * D_OUT_PAD * 4),        # output (f32)
    )

    out = pl.pallas_call(
        _traj_pred_kernel,
        out_shape=jax.ShapeDtypeStruct((M, D_OUT_PAD), jnp.float32),
        grid_spec=pltpu.PrefetchScalarGridSpec(
            num_scalar_prefetch=0,
            grid=(num_tiles,),
            in_specs=[
                pl.BlockSpec((tile_m, D_IN), lambda i: (i, 0)),        # x rows (f32)
                pl.BlockSpec((D_IN, 2 * D_HID), lambda i: (0, 0)),     # fused W (resident)
                pl.BlockSpec((8, D_HID), lambda i: (0, 0)),            # packed vecs
                pl.BlockSpec((D_HID, D_OUT_PAD), lambda i: (0, 0)),    # w2 (padded)
            ],
            out_specs=pl.BlockSpec((tile_m, D_OUT_PAD), lambda i: (i, 0)),
        ),
        compiler_params=pltpu.CompilerParams(
            dimension_semantics=("parallel",)),
        cost_estimate=cost,
    )(x, wa, vecs, w2p)

    # Drop only the zero-padded output lanes (rows are already exact), then
    # reshape to (B, N, 30, 2); everything stays batched on device.
    reg = out[:, :D_OUT].reshape(B, N, NUM_PRED_POINTS, 2)
    return {"reg": reg}


def _ref_forward(actors, params, matmul_dtype=jnp.float32):
    """Pure-JAX reference (optionally with the same bf16 matmul operands)."""
    w1, b1, g, beta, ws, bs, w2, b2 = params
    x = actors.astype(matmul_dtype)
    h = jnp.dot(x, w1.astype(matmul_dtype),
                preferred_element_type=jnp.float32) + b1
    mu = h.mean(-1, keepdims=True)
    var = ((h - mu) ** 2).mean(-1, keepdims=True)
    hn = (h - mu) * jax.lax.rsqrt(var + LN_EPS) * g + beta
    hn = jnp.maximum(hn, 0.0)
    res = jnp.dot(x, ws.astype(matmul_dtype),
                  preferred_element_type=jnp.float32) + bs
    feat = (hn + res).astype(matmul_dtype)
    return jnp.dot(feat, w2.astype(matmul_dtype),
                   preferred_element_type=jnp.float32) + b2


if __name__ == "__main__":
    key = jax.random.PRNGKey(0)
    k = jax.random.split(key, 4)

    B, N = 2, 64  # 2 batch elements, 64 actors each -> M = 128 rows (1 tile)
    actors = jax.random.normal(k[0], (B, N, D_IN), jnp.float32)

    # Deterministic synthetic parameters (common_init: small-std weights,
    # zero biases, LN gamma=1 / beta=0).
    w1 = jax.random.normal(k[1], (D_IN, D_HID), jnp.float32) * 0.02
    b1 = jnp.zeros((1, D_HID), jnp.float32)
    g = jnp.ones((1, D_HID), jnp.float32)
    beta = jnp.zeros((1, D_HID), jnp.float32)
    ws = jax.random.normal(k[2], (D_IN, D_HID), jnp.float32) * 0.02
    bs = jnp.zeros((1, D_HID), jnp.float32)
    w2 = jax.random.normal(k[3], (D_HID, D_OUT), jnp.float32) * 0.02
    b2 = jnp.zeros((1, D_OUT), jnp.float32)
    params = (w1, b1, g, beta, ws, bs, w2, b2)

    out = traj_predicter_forward(actors, params)
    reg = jax.block_until_ready(out["reg"])
    assert reg.shape == (B, N, NUM_PRED_POINTS, 2)

    # Tight check vs a reference using the same bf16 matmul operands.
    ref_bf16 = _ref_forward(actors, params, jnp.bfloat16)
    ref_bf16 = ref_bf16.reshape(B, N, NUM_PRED_POINTS, 2)
    assert jnp.allclose(reg, ref_bf16, atol=2e-3, rtol=2e-3)

    # Looser sanity check vs the full-f32 reference (module semantics).
    ref_f32 = _ref_forward(actors, params, jnp.float32)
    ref_f32 = ref_f32.reshape(B, N, NUM_PRED_POINTS, 2)
    assert jnp.allclose(reg, ref_f32, atol=3e-2, rtol=3e-2)

    # Second call with a non-tile-aligned, larger M exercises the ragged last
    # block path (no wrapper-side padding) and the >=2-tile split.
    B2, N2 = 3, 300  # M = 900 -> tile_m = 456, 2 grid steps, ragged last tile
    actors2 = jax.random.normal(jax.random.PRNGKey(1), (B2, N2, D_IN), jnp.float32)
    reg2 = jax.block_until_ready(traj_predicter_forward(actors2, params)["reg"])
    ref2 = _ref_forward(actors2, params, jnp.bfloat16).reshape(
        B2, N2, NUM_PRED_POINTS, 2)
    assert jnp.allclose(reg2, ref2, atol=2e-3, rtol=2e-3)

    print("KERNEL_OK")
</pallas_src>

<mosaic_0001>
module attributes {stable_mosaic.version = 11 : i64} {
  func.func @_traj_pred_kernel(%arg0: i32, %arg1: memref<128x256xf32, #tpu.memory_space<vmem>>, %arg2: memref<256x256xbf16, #tpu.memory_space<vmem>>, %arg3: memref<8x128xf32, #tpu.memory_space<vmem>>, %arg4: memref<128x128xbf16, #tpu.memory_space<vmem>>, %arg5: memref<128x128xf32, #tpu.memory_space<vmem>>) attributes {dimension_semantics = [#tpu.dimension_semantics<parallel>], iteration_bounds = array<i64: 1>, scalar_prefetch = 0 : i64, scratch_operands = 0 : i64, tpu.core_type = #tpu.core_type<tc>, window_params = [{transform_indices = @transform_0, window_bounds = array<i64: 128, 256>}, {pipeline_mode = #tpu.pipeline_mode<synchronous>, transform_indices = @transform_1, window_bounds = array<i64: 256, 256>}, {pipeline_mode = #tpu.pipeline_mode<synchronous>, transform_indices = @transform_2, window_bounds = array<i64: 8, 128>}, {pipeline_mode = #tpu.pipeline_mode<synchronous>, transform_indices = @transform_3, window_bounds = array<i64: 128, 128>}, {transform_indices = @transform_4, window_bounds = array<i64: 128, 128>}]} {
    %c0 = arith.constant 0 : index
    %c0_0 = arith.constant 0 : index
    %0 = vector.load %arg1[%c0, %c0_0] : memref<128x256xf32, #tpu.memory_space<vmem>>, vector<128x256xf32>
    %1 = arith.truncf %0 : vector<128x256xf32> to vector<128x256xbf16>
    %c0_1 = arith.constant 0 : index
    %c0_2 = arith.constant 0 : index
    %2 = vector.load %arg3[%c0_1, %c0_2] : memref<8x128xf32, #tpu.memory_space<vmem>>, vector<8x128xf32>
    %3 = vector.extract_strided_slice %2 {offsets = [0, 0], sizes = [1, 128], strides = [1, 1]} : vector<8x128xf32> to vector<1x128xf32>
    %4 = vector.extract_strided_slice %2 {offsets = [1, 0], sizes = [1, 128], strides = [1, 1]} : vector<8x128xf32> to vector<1x128xf32>
    %5 = vector.extract_strided_slice %2 {offsets = [2, 0], sizes = [1, 128], strides = [1, 1]} : vector<8x128xf32> to vector<1x128xf32>
    %6 = vector.extract_strided_slice %2 {offsets = [3, 0], sizes = [1, 128], strides = [1, 1]} : vector<8x128xf32> to vector<1x128xf32>
    %7 = vector.extract_strided_slice %2 {offsets = [4, 0], sizes = [1, 128], strides = [1, 1]} : vector<8x128xf32> to vector<1x128xf32>
    %c0_3 = arith.constant 0 : index
    %c0_4 = arith.constant 0 : index
    %8 = vector.load %arg2[%c0_3, %c0_4] : memref<256x256xbf16, #tpu.memory_space<vmem>>, vector<256x256xbf16>
    %cst = arith.constant dense<0.000000e+00> : vector<128x256xf32>
    %9 = tpu.matmul %1, %8, %cst {dimension_numbers = #tpu.dot_dimension_numbers<[1], [0], [0], [1], [0, 0, 1, 1], [], []>} : vector<128x256xbf16>, vector<256x256xbf16>, vector<128x256xf32> -> vector<128x256xf32>
    %10 = vector.extract_strided_slice %9 {offsets = [0, 0], sizes = [128, 128], strides = [1, 1]} : vector<128x256xf32> to vector<128x128xf32>
    %11 = vector.broadcast %3 : vector<1x128xf32> to vector<128x128xf32>
    %12 = arith.addf %10, %11 : vector<128x128xf32>
    %13 = vector.extract_strided_slice %9 {offsets = [0, 128], sizes = [128, 128], strides = [1, 1]} : vector<128x256xf32> to vector<128x128xf32>
    %14 = vector.broadcast %4 : vector<1x128xf32> to vector<128x128xf32>
    %15 = arith.addf %13, %14 : vector<128x128xf32>
    %cst_5 = arith.constant dense<0.000000e+00> : vector<128xf32>
    %16 = vector.multi_reduction <add>, %12, %cst_5 [1] : vector<128x128xf32> to vector<128xf32>
    %17 = vector.shape_cast %16 : vector<128xf32> to vector<128x1xf32>
    %cst_6 = arith.constant 1.280000e+02 : f32
    %18 = vector.broadcast %cst_6 : f32 to vector<128x1xf32>
    %19 = arith.divf %17, %18 : vector<128x1xf32>
    %20 = vector.broadcast %19 : vector<128x1xf32> to vector<128x128xf32>
    %21 = arith.subf %12, %20 : vector<128x128xf32>
    %22 = arith.mulf %21, %21 : vector<128x128xf32>
    %cst_7 = arith.constant dense<0.000000e+00> : vector<128xf32>
    %23 = vector.multi_reduction <add>, %22, %cst_7 [1] : vector<128x128xf32> to vector<128xf32>
    %24 = vector.shape_cast %23 : vector<128xf32> to vector<128x1xf32>
    %cst_8 = arith.constant 1.280000e+02 : f32
    %25 = vector.broadcast %cst_8 : f32 to vector<128x1xf32>
    %26 = arith.divf %24, %25 : vector<128x1xf32>
    %27 = vector.broadcast %19 : vector<128x1xf32> to vector<128x128xf32>
    %28 = arith.subf %12, %27 : vector<128x128xf32>
    %cst_9 = arith.constant 9.99999974E-6 : f32
    %29 = vector.broadcast %cst_9 : f32 to vector<128x1xf32>
    %30 = arith.addf %26, %29 : vector<128x1xf32>
    %31 = math.rsqrt %30 : vector<128x1xf32>
    %32 = vector.broadcast %31 : vector<128x1xf32> to vector<128x128xf32>
    %33 = arith.mulf %28, %32 : vector<128x128xf32>
    %34 = vector.broadcast %5 : vector<1x128xf32> to vector<128x128xf32>
    %35 = arith.mulf %33, %34 : vector<128x128xf32>
    %36 = vector.broadcast %6 : vector<1x128xf32> to vector<128x128xf32>
    %37 = arith.addf %35, %36 : vector<128x128xf32>
    %cst_10 = arith.constant 0.000000e+00 : f32
    %38 = vector.broadcast %cst_10 : f32 to vector<128x128xf32>
    %39 = arith.maximumf %37, %38 : vector<128x128xf32>
    %40 = arith.addf %39, %15 : vector<128x128xf32>
    %41 = arith.truncf %40 : vector<128x128xf32> to vector<128x128xbf16>
    %c0_11 = arith.constant 0 : index
    %c0_12 = arith.constant 0 : index
    %42 = vector.load %arg4[%c0_11, %c0_12] : memref<128x128xbf16, #tpu.memory_space<vmem>>, vector<128x128xbf16>
    %cst_13 = arith.constant dense<0.000000e+00> : vector<128x128xf32>
    %43 = tpu.matmul %41, %42, %cst_13 {dimension_numbers = #tpu.dot_dimension_numbers<[1], [0], [0], [1], [0, 0, 1, 1], [], []>} : vector<128x128xbf16>, vector<128x128xbf16>, vector<128x128xf32> -> vector<128x128xf32>
    %44 = vector.broadcast %7 : vector<1x128xf32> to vector<128x128xf32>
    %45 = arith.addf %43, %44 : vector<128x128xf32>
    %c0_14 = arith.constant 0 : index
    %c0_15 = arith.constant 0 : index
    %46 = vector.load %arg5[%c0_14, %c0_15] : memref<128x128xf32, #tpu.memory_space<vmem>>, vector<128x128xf32>
    tpu.vector_store %arg5[%c0_14, %c0_15], %45 {strides = array<i32>} : memref<128x128xf32, #tpu.memory_space<vmem>>, vector<128x128xf32>,
    return
  }
  func.func @transform_0(%arg0: i32) -> (i32, i32) {
    %c0_i32 = arith.constant 0 : i32
    %c0_i32_0 = arith.constant 0 : i32
    return %arg0, %c0_i32 : i32, i32
  }
  func.func @transform_1(%arg0: i32) -> (i32, i32) {
    %c0_i32 = arith.constant 0 : i32
    %c0_i32_0 = arith.constant 0 : i32
    %c0_i32_1 = arith.constant 0 : i32
    return %c0_i32, %c0_i32_0 : i32, i32
  }
  func.func @transform_2(%arg0: i32) -> (i32, i32) {
    %c0_i32 = arith.constant 0 : i32
    %c0_i32_0 = arith.constant 0 : i32
    %c0_i32_1 = arith.constant 0 : i32
    return %c0_i32, %c0_i32_0 : i32, i32
  }
  func.func @transform_3(%arg0: i32) -> (i32, i32) {
    %c0_i32 = arith.constant 0 : i32
    %c0_i32_0 = arith.constant 0 : i32
    %c0_i32_1 = arith.constant 0 : i32
    return %c0_i32, %c0_i32_0 : i32, i32
  }
  func.func @transform_4(%arg0: i32) -> (i32, i32) {
    %c0_i32 = arith.constant 0 : i32
    %c0_i32_0 = arith.constant 0 : i32
    return %arg0, %c0_i32 : i32, i32
  }
}

</mosaic_0001>

<bundles_post_ra>
// kernel: tpu_custom_call.1
= control target key start
LH: loop header
LB: loop body
LE: loop exit
PB: predicated region body
PF: predicated region fallthrough
CT: control target
= control target key end

     0   :  { %9 = vsyncpa [#allocation3], 0  ;;  %s1532_s0 = inlined_call_operand.hbm [shape: f32[128,256], index: 0, kind: input, shape index: {}]   ;;  %s1533_s1 = inlined_call_operand.hbm [shape: bf16[256,256], index: 1, kind: input, shape index: {}]   ;;  %s1534_s2 = inlined_call_operand.hbm [shape: f32[8,128], index: 2, kind: input, shape index: {}]   ;;  %s1535_s3 = inlined_call_operand.hbm [shape: bf16[128,128], index: 3, kind: input, shape index: {}]   ;;  %s1536_s4 = inlined_call_operand.hbm [shape: f32[128,128], index: 4, kind: output, shape index: {}]  }
   0x1   :  { %10 = vsyncpa [#allocation6], 0 }
   0x2   :  { %11 = vsyncpa [#allocation9], 0 }
   0x3   :  { %12 = vsyncpa [#allocation4], 0  ;;  %s1218_s15 = smov [#allocation5]  }
   0x4   :  { %s30_s16 = sshll.u32 %s1218_s15, 4  ;;  %s31_s16 = int_to_ptr.vmem [resolvable:$true] %s30_s16 }
   0x5   :  { %s1118_s17 = scalar_lea.vmem %s31_s16, 4096  ;;  %p1123_p1 = scmp.lt.s32.totalorder %s31_s16, %s31_s16 }
   0x6   :  { %p1119_p0 = scmp.ne.s32.totalorder %s31_s16, %s1118_s17  ;;  %p1124_p2 = scmp.lt.s32.totalorder %s1118_s17, %s1118_s17 }
   0x8   :  { %p1125_p3 = por %p1124_p2, %p1123_p1 }
   0xa   :  { %p1126_p4 = pnand %p1125_p3, %p1119_p0 }
   0xc   :  { %1129 = shalt.err (!%p1126_p4)
}
   0xd   :  { %s1219_s18 = smov 128   ;;  %s1220_s19 = smov 8  }
   0xe   :  { %36 = dma.hbm_to_vmem [thread:$0]  %s1533_s1, 4096, %s31_s16, [#allocation6], %s1219_s18, %s1219_s18, %s1220_s19  }
   0xf   :  { %s1221_s22 = smov [#allocation2]  }
  0x10   :  { %s18_s23 = sshll.u32 %s1221_s22, 4  ;;  %s19_s23 = int_to_ptr.vmem [resolvable:$true] %s18_s23 }
  0x11   :  { %s1138_s24 = scalar_lea.vmem %s19_s23, 4096  ;;  %p1143_p6 = scmp.lt.s32.totalorder %s19_s23, %s19_s23 }
  0x12   :  { %p1139_p5 = scmp.ne.s32.totalorder %s19_s23, %s1138_s24  ;;  %p1144_p7 = scmp.lt.s32.totalorder %s1138_s24, %s1138_s24 }
  0x14   :  { %p1145_p8 = por %p1144_p7, %p1143_p6 }
  0x16   :  { %p1146_p9 = pnand %p1145_p8, %p1139_p5 }
  0x18   :  { %1149 = shalt.err (!%p1146_p9)
}
  0x19   :  { %s1222_s25 = smov 256   ;;  %s1223_s26 = smov 16  }
  0x1a   :  { %24 = dma.hbm_to_vmem [thread:$0]  %s1532_s0, 4096, %s19_s23, [#allocation3], %s1222_s25, %s1222_s25, %s1223_s26  }
  0x1b   :  { %s1224_s29 = smov [#allocation7]   ;;  %s1225_s5 = smov [#allocation8]  }
  0x1c   :  { %s43_s30 = sshll.u32 %s1224_s29, 4  ;;  %s52_s1 = sshll.u32 %s1225_s5, 4  ;;  %s44_s30 = int_to_ptr.vmem [resolvable:$true] %s43_s30  ;;  %s53_s1 = int_to_ptr.vmem [resolvable:$true] %s52_s1 }
  0x1d   :  { %s1158_s6 = scalar_lea.vmem %s44_s30, 128  ;;  %p1163_p11 = scmp.lt.s32.totalorder %s44_s30, %s44_s30 }
  0x1e   :  { %p1159_p10 = scmp.ne.s32.totalorder %s44_s30, %s1158_s6  ;;  %p1164_p12 = scmp.lt.s32.totalorder %s1158_s6, %s1158_s6 }
  0x20   :  { %p1165_p13 = por %p1164_p12, %p1163_p11 }
  0x22   :  { %p1166_p0 = pnand %p1165_p13, %p1159_p10 }
  0x24   :  { %1169 = shalt.err (!%p1166_p0)
}
  0x25   :  { %46 = dma.hbm_to_vmem [thread:$0]  %s1534_s2, 128, %s44_s30, [#allocation6]  }
  0x26   :  { %s1178_s9 = scalar_lea.vmem %s53_s1, 1024  ;;  %p1183_p2 = scmp.lt.s32.totalorder %s53_s1, %s53_s1 }
  0x27   :  { %p1179_p1 = scmp.ne.s32.totalorder %s53_s1, %s1178_s9  ;;  %p1184_p3 = scmp.lt.s32.totalorder %s1178_s9, %s1178_s9 }
  0x29   :  { %p1185_p4 = por %p1184_p3, %p1183_p2 }
  0x2b   :  { %p1186_p5 = pnand %p1185_p4, %p1179_p1 }
  0x2d   :  { %1189 = shalt.err (!%p1186_p5)
}
  0x2e   :  { %s1226_s0 = smov 64   ;;  %s1227_s10 = smov 4  }
  0x2f   :  { %58 = dma.hbm_to_vmem [thread:$0]  %s1535_s3, 1024, %s53_s1, [#allocation9], %s1226_s0, %s1226_s0, %s1227_s10  }
  0x30   :  { %1210 = dma.done.wait [#allocation3], 4096  }
  0x31   :  { %1211 = vsyncadd [#allocation3], 4294963200 }
  0x32   :  { %1212 = dma.done.wait [#allocation6], 4224  }
  0x33   :  { %1213 = vsyncadd [#allocation6], 4294963072 }
  0x34   :  { %1214 = dma.done.wait [#allocation9], 1024  }
  0x35   :  { %1215 = vsyncadd [#allocation9], 4294966272  ;;  %v1022_v0 = vld [vmem:[#allocation5 + $0x74] ss:$8 sps:$4 sm:$0xff]   ;;  %v1024_v1 = vld [vmem:[#allocation5 + $0x70] ss:$8 sps:$4 sm:$0xff]  }
  0x36   :  { %313 = vmatprep.subr.bf16.mxu0 %v1022_v0  ;;  %v1025_v2 = vld [vmem:[#allocation5 + $0x64] ss:$8 sps:$4 sm:$0xff]   ;;  %v1027_v3 = vld [vmem:[#allocation5 + $0x60] ss:$8 sps:$4 sm:$0xff]   ;;  %v1028_v4 = vld [vmem:[#allocation5 + $0x54] ss:$8 sps:$4 sm:$0xff]  }
  0x37   :  { %314 = vmatpush1.bf16.msra.mxu0 %v1024_v1  ;;  %v1030_v5 = vld [vmem:[#allocation5 + $0x50] ss:$8 sps:$4 sm:$0xff]   ;;  %v1031_v6 = vld [vmem:[#allocation5 + $0x44] ss:$8 sps:$4 sm:$0xff]   ;;  %v1033_v7 = vld [vmem:[#allocation5 + $0x40] ss:$8 sps:$4 sm:$0xff]  }
  0x38   :  { %315 = vmatprep.subr.bf16.mxu0 %v1025_v2  ;;  %v1034_v8 = vld [vmem:[#allocation5 + $0x34] ss:$8 sps:$4 sm:$0xff]   ;;  %v1036_v9 = vld [vmem:[#allocation5 + $0x30] ss:$8 sps:$4 sm:$0xff]   ;;  %v1037_v10 = vld [vmem:[#allocation5 + $0x24] ss:$8 sps:$4 sm:$0xff]  }
  0x39   :  { %v1039_v11 = vld [vmem:[#allocation5 + $0x20] ss:$8 sps:$4 sm:$0xff]   ;;  %v1040_v12 = vld [vmem:[#allocation5 + $0x14] ss:$8 sps:$4 sm:$0xff]   ;;  %v1042_v16 = vld [vmem:[#allocation5 + $0x10] ss:$8 sps:$4 sm:$0xff]  }
  0x3a   :  { %v73_v13 = vld [vmem:[#allocation2 + $0x8] sm:$0xff]  ;;  %v75_v14 = vld [vmem:[#allocation2 + $0x18] sm:$0xff]  ;;  %v72_v35 = vld [vmem:[#allocation2] sm:$0xff]  ;;  %s1228_s2 = smov [#allocation10]  }
  0x3b   :  { %316 = vmatpush1.bf16.msra.mxu0 %v1027_v3  ;;  %v105_v15 = vpack.c.bf16 %v75_v14, %v73_v13  ;;  %v1043_v17 = vld [vmem:[#allocation5 + $0x4] ss:$8 sps:$4 sm:$0xff]   ;;  %v1045_v18 = vld [vmem:[#allocation5] ss:$8 sps:$4 sm:$0xff]   ;;  %v1046_v19 = vld [vmem:[#allocation5 + $0xf4] ss:$8 sps:$4 sm:$0xff]  }
  0x3c   :  { %317 = vmatprep.subr.bf16.mxu0 %v1028_v4  ;;  %v1048_v20 = vld [vmem:[#allocation5 + $0xf0] ss:$8 sps:$4 sm:$0xff]   ;;  %v1049_v21 = vld [vmem:[#allocation5 + $0xe4] ss:$8 sps:$4 sm:$0xff]   ;;  %v1051_v22 = vld [vmem:[#allocation5 + $0xe0] ss:$8 sps:$4 sm:$0xff]  }
  0x3d   :  { %345 = vmatprep.mubr.bf16.mxu0 %v105_v15  ;;  %v1052_v23 = vld [vmem:[#allocation5 + $0xd4] ss:$8 sps:$4 sm:$0xff]   ;;  %v1054_v24 = vld [vmem:[#allocation5 + $0xd0] ss:$8 sps:$4 sm:$0xff]   ;;  %v1055_v25 = vld [vmem:[#allocation5 + $0xc4] ss:$8 sps:$4 sm:$0xff]  }
  0x3e   :  { %v1057_v26 = vld [vmem:[#allocation5 + $0xc0] ss:$8 sps:$4 sm:$0xff]   ;;  %v1058_v27 = vld [vmem:[#allocation5 + $0xb4] ss:$8 sps:$4 sm:$0xff]   ;;  %v1060_v28 = vld [vmem:[#allocation5 + $0xb0] ss:$8 sps:$4 sm:$0xff]  }
  0x3f   :  { %318 = vmatpush1.bf16.msra.mxu0 %v1030_v5  ;;  %v1061_v29 = vld [vmem:[#allocation5 + $0xa4] ss:$8 sps:$4 sm:$0xff]   ;;  %v1063_v30 = vld [vmem:[#allocation5 + $0xa0] ss:$8 sps:$4 sm:$0xff]   ;;  %v1064_v31 = vld [vmem:[#allocation5 + $0x94] ss:$8 sps:$4 sm:$0xff]  }
  0x40   :  { %319 = vmatprep.subr.bf16.mxu0 %v1031_v6  ;;  %v1066_v32 = vld [vmem:[#allocation5 + $0x90] ss:$8 sps:$4 sm:$0xff]   ;;  %v1067_v33 = vld [vmem:[#allocation5 + $0x84] ss:$8 sps:$4 sm:$0xff]   ;;  %v1069_v34 = vld [vmem:[#allocation5 + $0x80] ss:$8 sps:$4 sm:$0xff]  }
  0x41   :  { %v74_v36 = vld [vmem:[#allocation2 + $0x10] sm:$0xff]  ;;  %v77_v37 = vld [vmem:[#allocation2 + $0x28] sm:$0xff]  ;;  %v79_v38 = vld [vmem:[#allocation2 + $0x38] sm:$0xff]  ;;  %s909_s3 = sshll.u32 %s1228_s2, 4  ;;  %s910_s3 = int_to_ptr.vmem [resolvable:$true] %s909_s3 }
  0x42   :  { %v104_v39 = vpack.c.bf16 %v74_v36, %v72_v35  ;;  %v107_v40 = vpack.c.bf16 %v79_v38, %v77_v37  ;;  %v76_v41 = vld [vmem:[#allocation2 + $0x20] sm:$0xff]  ;;  %v78_v42 = vld [vmem:[#allocation2 + $0x30] sm:$0xff]  ;;  %v81_v43 = vld [vmem:[#allocation2 + $0x48] sm:$0xff]  ;;  %s1190_s13 = scalar_lea.vmem %s910_s3, 2048  ;;  %p1195_p7 = scmp.lt.s32.totalorder %s910_s3, %s910_s3 }
  0x43   :  { %320 = vmatpush1.bf16.msra.mxu0 %v1033_v7  ;;  %v83_v44 = vld [vmem:[#allocation2 + $0x58] sm:$0xff]  ;;  %v106_v45 = vpack.c.bf16 %v78_v42, %v76_v41  ;;  %v80_v47 = vld [vmem:[#allocation2 + $0x40] sm:$0xff]  ;;  %v82_v48 = vld [vmem:[#allocation2 + $0x50] sm:$0xff]  ;;  %p1191_p6 = scmp.ne.s32.totalorder %s910_s3, %s1190_s13  ;;  %p1196_p8 = scmp.lt.s32.totalorder %s1190_s13, %s1190_s13 }
  0x44   :  { %321 = vmatprep.subr.bf16.mxu0 %v1034_v8  ;;  %v109_v46 = vpack.c.bf16 %v83_v44, %v81_v43  ;;  %v85_v49 = vld [vmem:[#allocation2 + $0x68] sm:$0xff]  ;;  %v87_v50 = vld [vmem:[#allocation2 + $0x78] sm:$0xff]  ;;  %v108_v51 = vpack.c.bf16 %v82_v48, %v80_v47  ;;  %v84_v53 = vld [vmem:[#allocation2 + $0x60] sm:$0xff] }
  0x45   :  { %v111_v52 = vpack.c.bf16 %v87_v50, %v85_v49  ;;  %v86_v54 = vld [vmem:[#allocation2 + $0x70] sm:$0xff]  ;;  %v89_v55 = vld [vmem:[#allocation2 + $0x88] sm:$0xff]  ;;  %v91_v56 = vld [vmem:[#allocation2 + $0x98] sm:$0xff]  ;;  %p1197_p9 = por %p1196_p8, %p1195_p7 }
  0x46   :  { %v110_v57 = vpack.c.bf16 %v86_v54, %v84_v53  ;;  %v113_v58 = vpack.c.bf16 %v91_v56, %v89_v55  ;;  %v88_v59 = vld [vmem:[#allocation2 + $0x80] sm:$0xff]  ;;  %v90_v60 = vld [vmem:[#allocation2 + $0x90] sm:$0xff]  ;;  %v93_v61 = vld [vmem:[#allocation2 + $0xa8] sm:$0xff] }
  0x47   :  { %322 = vmatpush1.bf16.msra.mxu0 %v1036_v9  ;;  %v95_v62 = vld [vmem:[#allocation2 + $0xb8] sm:$0xff]  ;;  %v112_v63 = vpack.c.bf16 %v90_v60, %v88_v59  ;;  %v92_v1 = vld [vmem:[#allocation2 + $0xa0] sm:$0xff]  ;;  %v94_v2 = vld [vmem:[#allocation2 + $0xb0] sm:$0xff]  ;;  %p1198_p10 = pnand %p1197_p9, %p1191_p6 }
  0x48   :  { %323 = vmatprep.subr.bf16.mxu0 %v1037_v10  ;;  %v115_v0 = vpack.c.bf16 %v95_v62, %v93_v61  ;;  %v97_v3 = vld [vmem:[#allocation2 + $0xc8] sm:$0xff]  ;;  %v99_v4 = vld [vmem:[#allocation2 + $0xd8] sm:$0xff]  ;;  %v114_v5 = vpack.c.bf16 %v94_v2, %v92_v1  ;;  %v96_v7 = vld [vmem:[#allocation2 + $0xc0] sm:$0xff] }
  0x49   :  { %v117_v6 = vpack.c.bf16 %v99_v4, %v97_v3  ;;  %v98_v8 = vld [vmem:[#allocation2 + $0xd0] sm:$0xff]  ;;  %v101_v9 = vld [vmem:[#allocation2 + $0xe8] sm:$0xff]  ;;  %v103_v10 = vld [vmem:[#allocation2 + $0xf8] sm:$0xff] }
  0x4a   :  { %v100_v13 = vld [vmem:[#allocation2 + $0xe0] sm:$0xff]  ;;  %v102_v14 = vld [vmem:[#allocation2 + $0xf0] sm:$0xff] }
  0x4b   :  { %324 = vmatpush1.bf16.msra.mxu0 %v1039_v11  ;;  %v116_v11 = vpack.c.bf16 %v98_v8, %v96_v7  ;;  %v118_v15 = vpack.c.bf16 %v102_v14, %v100_v13 }
  0x4c   :  { %325 = vmatprep.subr.bf16.mxu0 %v1040_v12  ;;  %v119_v12 = vpack.c.bf16 %v103_v10, %v101_v9 }
  0x4f   :  { %326 = vmatpush1.bf16.msra.mxu0 %v1042_v16  ;;  %v426_v16 = vlaneseq }
  0x50   :  { %327 = vmatprep.subr.bf16.mxu0 %v1043_v17 }
  0x51   :  { %v1269_v17 = vshrl.u32 %v426_v16, 7 }
  0x53   :  { %328 = vmatpush1.bf16.msra.mxu0 %v1045_v18  ;;  %v428_v18 = vsub.s32 0, %v1269_v17 }
  0x54   :  { %329 = vmatprep.subr.bf16.mxu0 %v1046_v19  ;;  %v1272_v19 = vld [vmem:[#allocation7] sm:$0xff] }
  0x57   :  { %330 = vmatpush2.bf16.msra.mxu0 %v1048_v20  ;;  %v429_v20 = vrot.slane %v1272_v19, %v428_v18 }
  0x58   :  { %331 = vmatprep.subr.bf16.mxu0 %v1049_v21 }
  0x5b   :  { %332 = vmatpush2.bf16.msra.mxu0 %v1051_v22 }
  0x5c   :  { %333 = vmatprep.subr.bf16.mxu0 %v1052_v23 }
  0x5f   :  { %334 = vmatpush2.bf16.msra.mxu0 %v1054_v24 }
  0x60   :  { %335 = vmatprep.subr.bf16.mxu0 %v1055_v25 }
  0x63   :  { %336 = vmatpush2.bf16.msra.mxu0 %v1057_v26 }
  0x64   :  { %337 = vmatprep.subr.bf16.mxu0 %v1058_v27 }
  0x67   :  { %338 = vmatpush2.bf16.msra.mxu0 %v1060_v28 }
  0x68   :  { %339 = vmatprep.subr.bf16.mxu0 %v1061_v29 }
  0x6b   :  { %340 = vmatpush2.bf16.msra.mxu0 %v1063_v30 }
  0x6c   :  { %341 = vmatprep.subr.bf16.mxu0 %v1064_v31 }
  0x6f   :  { %342 = vmatpush2.bf16.msra.mxu0 %v1066_v32 }
  0x70   :  { %343 = vmatprep.subr.bf16.mxu0 %v1067_v33 }
  0x73   :  { %344 = vmatpush2.bf16.msra.mxu0 %v1069_v34 }
  0x76   :  { %346 = vmatmul.mubr.bf16.vlgmr.msra.gmra.mxu0 %v104_v39 }
  0x77   :  { %355 = vmatprep.mubr.bf16.mxu0 %v107_v40 }
  0x7e   :  { %356 = vmatmul.mubr.bf16.gmra.mxu0 %v106_v45 }
  0x7f   :  { %365 = vmatprep.mubr.bf16.mxu0 %v109_v46 }
  0x86   :  { %366 = vmatmul.mubr.bf16.gmra.mxu0 %v108_v51 }
  0x87   :  { %375 = vmatprep.mubr.bf16.mxu0 %v111_v52 }
  0x8e   :  { %376 = vmatmul.mubr.bf16.gmra.mxu0 %v110_v57 }
  0x8f   :  { %385 = vmatprep.mubr.bf16.mxu0 %v113_v58 }
  0x96   :  { %386 = vmatmul.mubr.bf16.gmra.mxu0 %v112_v63 }
  0x97   :  { %395 = vmatprep.mubr.bf16.mxu0 %v115_v0 }
  0x9e   :  { %396 = vmatmul.mubr.bf16.gmra.mxu0 %v114_v5 }
  0x9f   :  { %405 = vmatprep.mubr.bf16.mxu0 %v117_v6 }
  0xa6   :  { %406 = vmatmul.mubr.bf16.gmra.mxu0 %v116_v11 }
  0xa7   :  { %415 = vmatprep.mubr.bf16.mxu0 %v119_v12 }
  0xae   :  { %416 = vmatmul.mubr.bf16.gmra.mxu0 %v118_v15 }
 0x136   :  { %v347_v21 = vpop.f32.mrf.mxu0 }
 0x137   :  { %v1275_v22 = vadd.f32 %v429_v20, %v347_v21 }
 0x138   :  { %v1277_v23 = vpop.f32.mrf.mxu0 }
 0x139   :  { %466 = vadd.xlane.f32.xlu0 %v1275_v22 }
 0x13a   :  { %v351_v24 = vpop.f32.mrf.mxu0 }
 0x13b   :  { %v1280_v25 = vadd.f32 %v429_v20, %v351_v24 }
 0x13c   :  { %v1282_v26 = vpop.f32.mrf.mxu0 }
 0x13d   :  { %468 = vadd.xlane.f32.xlu0 %v1280_v25 }
 0x13e   :  { %v357_v27 = vpop.f32.mrf.mxu0 }
 0x13f   :  { %v1285_v28 = vadd.f32 %v429_v20, %v357_v27 }
 0x140   :  { %v1287_v29 = vpop.f32.mrf.mxu0 }
 0x141   :  { %470 = vadd.xlane.f32.xlu1 %v1285_v28 }
 0x142   :  { %v361_v30 = vpop.f32.mrf.mxu0 }
 0x143   :  { %v1290_v31 = vadd.f32 %v429_v20, %v361_v30 }
 0x144   :  { %v1292_v32 = vpop.f32.mrf.mxu0 }
 0x145   :  { %472 = vadd.xlane.f32.xlu1 %v1290_v31 }
 0x146   :  { %v367_v33 = vpop.f32.mrf.mxu0 }
 0x147   :  { %v1295_v34 = vadd.f32 %v429_v20, %v367_v33 }
 0x148   :  { %v1297_v35 = vpop.f32.mrf.mxu0 }
 0x149   :  { %474 = vadd.xlane.f32.xlu0 %v1295_v34 }
 0x14a   :  { %v371_v36 = vpop.f32.mrf.mxu0 }
 0x14b   :  { %v1300_v37 = vadd.f32 %v429_v20, %v371_v36 }
 0x14c   :  { %v1302_v38 = vpop.f32.mrf.mxu0 }
 0x14d   :  { %476 = vadd.xlane.f32.xlu1 %v1300_v37 }
 0x14e   :  { %v377_v39 = vpop.f32.mrf.mxu0 }
 0x14f   :  { %v1305_v40 = vadd.f32 %v429_v20, %v377_v39 }
 0x150   :  { %v1307_v41 = vpop.f32.mrf.mxu0 }
 0x151   :  { %478 = vadd.xlane.f32.xlu0 %v1305_v40 }
 0x152   :  { %v381_v42 = vpop.f32.mrf.mxu0 }
 0x153   :  { %v1310_v43 = vadd.f32 %v429_v20, %v381_v42  ;;  %v1070_v42 = vld [vmem:[#allocation8 + $0x38] sm:$0xff]  }
 0x154   :  { %v1312_v44 = vpop.f32.mrf.mxu0  ;;  %979 = vmatprep.subr.bf16.mxu1 %v1070_v42 }
 0x155   :  { %480 = vadd.xlane.f32.xlu1 %v1310_v43  ;;  %980 = vmatpush3.bf16.msra.mxu1 %v1070_v42 }
 0x156   :  { %v387_v45 = vpop.f32.mrf.mxu0 }
 0x157   :  { %v1315_v46 = vadd.f32 %v429_v20, %v387_v45 }
 0x158   :  { %v1317_v47 = vpop.f32.mrf.mxu0 }
 0x159   :  { %482 = vadd.xlane.f32.xlu0 %v1315_v46 }
 0x15a   :  { %v391_v48 = vpop.f32.mrf.mxu0 }
 0x15b   :  { %v1320_v49 = vadd.f32 %v429_v20, %v391_v48 }
 0x15c   :  { %v1322_v50 = vpop.f32.mrf.mxu0 }
 0x15d   :  { %484 = vadd.xlane.f32.xlu1 %v1320_v49 }
 0x15e   :  { %v397_v51 = vpop.f32.mrf.mxu0 }
 0x15f   :  { %v1325_v52 = vadd.f32 %v429_v20, %v397_v51 }
 0x160   :  { %v1327_v53 = vpop.f32.mrf.mxu0 }
 0x161   :  { %486 = vadd.xlane.f32.xlu0 %v1325_v52 }
 0x162   :  { %v401_v54 = vpop.f32.mrf.mxu0 }
 0x163   :  { %v1330_v55 = vadd.f32 %v429_v20, %v401_v54 }
 0x164   :  { %v1332_v56 = vpop.f32.mrf.mxu0 }
 0x165   :  { %488 = vadd.xlane.f32.xlu1 %v1330_v55 }
 0x166   :  { %v407_v57 = vpop.f32.mrf.mxu0 }
 0x167   :  { %v1335_v58 = vadd.f32 %v429_v20, %v407_v57 }
 0x168   :  { %v1337_v59 = vpop.f32.mrf.mxu0 }
 0x169   :  { %490 = vadd.xlane.f32.xlu0 %v1335_v58 }
 0x16a   :  { %v411_v60 = vpop.f32.mrf.mxu0 }
 0x16b   :  { %v1340_v61 = vadd.f32 %v429_v20, %v411_v60 }
 0x16c   :  { %v1342_v62 = vpop.f32.mrf.mxu0 }
 0x16d   :  { %492 = vadd.xlane.f32.xlu1 %v1340_v61 }
 0x16e   :  { %v417_v63 = vpop.f32.mrf.mxu0 }
 0x16f   :  { %v1345_v0 = vadd.f32 %v429_v20, %v417_v63  ;;  %v1072_v63 = vld [vmem:[#allocation8 + $0x28] sm:$0xff]  }
 0x170   :  { %v1347_v1 = vpop.f32.mrf.mxu0 }
 0x171   :  { %494 = vadd.xlane.f32.xlu0 %v1345_v0 }
 0x172   :  { %v421_v2 = vpop.f32.mrf.mxu0 }
 0x173   :  { %v1350_v3 = vadd.f32 %v429_v20, %v421_v2 }
 0x175   :  { %496 = vadd.xlane.f32.xlu1 %v1350_v3 }
 0x1c2   :  { %v467_v4 = vpop.xlane.xlu0 %466 }
 0x1c3   :  { %v499_v5 = vmul.f32 0.0078125, %v467_v4 }
 0x1c5   :  { %v1354_v6 = vsub.f32 %v1275_v22, %v499_v5 }
 0x1c6   :  { %v469_v7 = vpop.xlane.xlu0 %468 }
 0x1c7   :  { %v500_v8 = vmul.f32 0.0078125, %v469_v7  ;;  %v531_v9 = vmul.f32 %v1354_v6, %v1354_v6  ;;  %v1073_v7 = vld [vmem:[#allocation8 + $0x20] sm:$0xff]  }
 0x1c9   :  { %v1359_v10 = vsub.f32 %v1280_v25, %v500_v8  ;;  %547 = vadd.xlane.f32.xlu0 %v531_v9 }
 0x1ca   :  { %v471_v11 = vpop.xlane.xlu1 %470 }
 0x1cb   :  { %v501_v12 = vmul.f32 0.0078125, %v471_v11  ;;  %v532_v13 = vmul.f32 %v1359_v10, %v1359_v10 }
 0x1cd   :  { %v1364_v14 = vsub.f32 %v1285_v28, %v501_v12  ;;  %549 = vadd.xlane.f32.xlu1 %v532_v13  ;;  %v1074_v12 = vld [vmem:[#allocation8 + $0x18] sm:$0xff]  }
 0x1ce   :  { %v473_v15 = vpop.xlane.xlu1 %472 }
 0x1cf   :  { %v502_v16 = vmul.f32 0.0078125, %v473_v15  ;;  %v533_v18 = vmul.f32 %v1364_v14, %v1364_v14 }
 0x1d1   :  { %v1369_v20 = vsub.f32 %v1290_v31, %v502_v16  ;;  %551 = vadd.xlane.f32.xlu0 %v533_v18  ;;  %v1075_v18 = vld [vmem:[#allocation8 + $0x10] sm:$0xff]  }
 0x1d2   :  { %v475_v21 = vpop.xlane.xlu0 %474 }
 0x1d3   :  { %v503_v22 = vmul.f32 0.0078125, %v475_v21  ;;  %v534_v24 = vmul.f32 %v1369_v20, %v1369_v20 }
 0x1d5   :  { %v1374_v25 = vsub.f32 %v1295_v34, %v503_v22  ;;  %553 = vadd.xlane.f32.xlu1 %v534_v24 }
 0x1d6   :  { %v477_v27 = vpop.xlane.xlu1 %476 }
 0x1d7   :  { %v504_v28 = vmul.f32 0.0078125, %v477_v27  ;;  %v535_v30 = vmul.f32 %v1374_v25, %v1374_v25  ;;  %v1076_v27 = vld [vmem:[#allocation8 + $0x8] sm:$0xff]  }
 0x1d9   :  { %v1379_v33 = vsub.f32 %v1300_v37, %v504_v28  ;;  %555 = vadd.xlane.f32.xlu0 %v535_v30  ;;  %v1071_v37 = vld [vmem:[#allocation8 + $0x30] sm:$0xff]  }
 0x1da   :  { %v479_v31 = vpop.xlane.xlu0 %478  ;;  %981 = vmatprep.subr.bf16.mxu1 %v1071_v37 }
 0x1db   :  { %v505_v36 = vmul.f32 0.0078125, %v479_v31  ;;  %v536_v39 = vmul.f32 %v1379_v33, %v1379_v33  ;;  %982 = vmatpush3.bf16.msra.mxu1 %v1071_v37 }
 0x1dc   :  { %983 = vmatprep.subr.bf16.mxu1 %v1072_v63 }
 0x1dd   :  { %v1384_v45 = vsub.f32 %v1305_v40, %v505_v36  ;;  %557 = vadd.xlane.f32.xlu1 %v536_v39  ;;  %v1077_v36 = vld [vmem:[#allocation8] sm:$0xff]  }
 0x1de   :  { %v481_v34 = vpop.xlane.xlu1 %480 }
 0x1df   :  { %v506_v48 = vmul.f32 0.0078125, %v481_v34  ;;  %v537_v51 = vmul.f32 %v1384_v45, %v1384_v45  ;;  %984 = vmatpush3.bf16.msra.mxu1 %v1072_v63 }
 0x1e0   :  { %985 = vmatprep.subr.bf16.mxu1 %v1073_v7 }
 0x1e1   :  { %v1389_v54 = vsub.f32 %v1310_v43, %v506_v48  ;;  %559 = vadd.xlane.f32.xlu0 %v537_v51 }
 0x1e2   :  { %v483_v57 = vpop.xlane.xlu0 %482 }
 0x1e3   :  { %v507_v60 = vmul.f32 0.0078125, %v483_v57  ;;  %v538_v40 = vmul.f32 %v1389_v54, %v1389_v54  ;;  %986 = vmatpush3.bf16.msra.mxu1 %v1073_v7 }
 0x1e4   :  { %987 = vmatprep.subr.bf16.mxu1 %v1074_v12 }
 0x1e5   :  { %v1394_v2 = vsub.f32 %v1315_v46, %v507_v60  ;;  %561 = vadd.xlane.f32.xlu1 %v538_v40 }
 0x1e6   :  { %v485_v4 = vpop.xlane.xlu1 %484 }
 0x1e7   :  { %v508_v5 = vmul.f32 0.0078125, %v485_v4  ;;  %v539_v43 = vmul.f32 %v1394_v2, %v1394_v2  ;;  %988 = vmatpush3.bf16.msra.mxu1 %v1074_v12  ;;  %v645_v12 = vsub.s32 2, %v1269_v17 }
 0x1e8   :  { %989 = vmatprep.subr.bf16.mxu1 %v1075_v18 }
 0x1e9   :  { %v1399_v8 = vsub.f32 %v1320_v49, %v508_v5  ;;  %563 = vadd.xlane.f32.xlu0 %v539_v43 }
 0x1ea   :  { %v487_v9 = vpop.xlane.xlu0 %486 }
 0x1eb   :  { %v509_v11 = vmul.f32 0.0078125, %v487_v9  ;;  %v540_v46 = vmul.f32 %v1399_v8, %v1399_v8  ;;  %990 = vmatpush3.bf16.msra.mxu1 %v1075_v18 }
 0x1ec   :  { %991 = vmatprep.subr.bf16.mxu1 %v1076_v27 }
 0x1ed   :  { %v1404_v13 = vsub.f32 %v1325_v52, %v509_v11  ;;  %565 = vadd.xlane.f32.xlu1 %v540_v46 }
 0x1ee   :  { %v489_v15 = vpop.xlane.xlu1 %488 }
 0x1ef   :  { %v510_v16 = vmul.f32 0.0078125, %v489_v15  ;;  %v541_v49 = vmul.f32 %v1404_v13, %v1404_v13  ;;  %992 = vmatpush3.bf16.msra.mxu1 %v1076_v27 }
 0x1f0   :  { %993 = vmatprep.subr.bf16.mxu1 %v1077_v36 }
 0x1f1   :  { %v1409_v21 = vsub.f32 %v1330_v55, %v510_v16  ;;  %567 = vadd.xlane.f32.xlu0 %v541_v49  ;;  %v665_v16 = vsub.s32 3, %v1269_v17 }
 0x1f2   :  { %v491_v22 = vpop.xlane.xlu0 %490 }
 0x1f3   :  { %v511_v24 = vmul.f32 0.0078125, %v491_v22  ;;  %v542_v52 = vmul.f32 %v1409_v21, %v1409_v21  ;;  %994 = vmatpush3.bf16.msra.mxu1 %v1077_v36  ;;  %v1436_v22 = vrot.slane %v1272_v19, %v645_v12 }
 0x1f5   :  { %v1414_v28 = vsub.f32 %v1335_v58, %v511_v24  ;;  %569 = vadd.xlane.f32.xlu1 %v542_v52 }
 0x1f6   :  { %v493_v30 = vpop.xlane.xlu1 %492 }
 0x1f7   :  { %v512_v31 = vmul.f32 0.0078125, %v493_v30  ;;  %v543_v55 = vmul.f32 %v1414_v28, %v1414_v28  ;;  %v1440_v30 = vrot.slane %v1272_v19, %v665_v16 }
 0x1f9   :  { %v1419_v39 = vsub.f32 %v1340_v61, %v512_v31  ;;  %571 = vadd.xlane.f32.xlu0 %v543_v55  ;;  %v448_v31 = vsub.s32 1, %v1269_v17 }
 0x1fa   :  { %v495_v42 = vpop.xlane.xlu0 %494 }
 0x1fb   :  { %v513_v34 = vmul.f32 0.0078125, %v495_v42  ;;  %v544_v58 = vmul.f32 %v1419_v39, %v1419_v39 }
 0x1fd   :  { %v1424_v48 = vsub.f32 %v1345_v0, %v513_v34  ;;  %573 = vadd.xlane.f32.xlu1 %v544_v58 }
 0x1fe   :  { %v497_v51 = vpop.xlane.xlu1 %496 }
 0x1ff   :  { %v514_v37 = vmul.f32 0.0078125, %v497_v51  ;;  %v545_v57 = vmul.f32 %v1424_v48, %v1424_v48 }
 0x201   :  { %v1429_v61 = vsub.f32 %v1350_v3, %v514_v37  ;;  %575 = vadd.xlane.f32.xlu0 %v545_v57  ;;  %v1447_v57 = vrot.slane %v1272_v19, %v448_v31 }
 0x203   :  { %v546_v60 = vmul.f32 %v1429_v61, %v1429_v61 }
 0x205   :  { %577 = vadd.xlane.f32.xlu1 %v546_v60 }
 0x252   :  { %v548_v40 = vpop.xlane.xlu0 %547 }
 0x253   :  { %v579_v63 = vmul.f32 0.0078125, %v548_v40 }
 0x255   :  { %v595_v4 = vadd.f32 1e-05, %v579_v63 }
 0x256   :  { %v550_v5 = vpop.xlane.xlu1 %549 }
 0x257   :  { %1078 = vrsqrt.f32 %v595_v4  ;;  %v580_v0 = vmul.f32 0.0078125, %v550_v5 }
 0x259   :  { %v596_v43 = vadd.f32 1e-05, %v580_v0 }
 0x25a   :  { %v552_v7 = vpop.xlane.xlu0 %551 }
 0x25b   :  { %1080 = vrsqrt.f32 %v596_v43  ;;  %v581_v9 = vmul.f32 0.0078125, %v552_v7  ;;  %v451_v7 = vadd.f32 %v1447_v57, %v1282_v26 }
 0x25d   :  { %v597_v11 = vadd.f32 1e-05, %v581_v9 }
 0x25e   :  { %v554_v46 = vpop.xlane.xlu1 %553 }
 0x25f   :  { %1082 = vrsqrt.f32 %v597_v11  ;;  %v582_v3 = vmul.f32 0.0078125, %v554_v46 }
 0x261   :  { %v598_v15 = vadd.f32 1e-05, %v582_v3 }
 0x262   :  { %v556_v49 = vpop.xlane.xlu0 %555 }
 0x263   :  { %1084 = vrsqrt.f32 %v598_v15  ;;  %v583_v18 = vmul.f32 0.0078125, %v556_v49 }
 0x264   :  { %v1079_v24 = vpop.eup %1078 }
 0x265   :  { %v599_v52 = vadd.f32 1e-05, %v583_v18  ;;  %v627_v27 = vmul.f32 %v1079_v24, %v1354_v6 }
 0x266   :  { %v558_v55 = vpop.xlane.xlu1 %557 }
 0x267   :  { %1086 = vrsqrt.f32 %v599_v52  ;;  %v584_v36 = vmul.f32 0.0078125, %v558_v55  ;;  %v647_v42 = vmul.f32 %v1436_v22, %v627_v27 }
 0x268   :  { %v1081_v34 = vpop.eup %1080 }
 0x269   :  { %v600_v58 = vadd.f32 1e-05, %v584_v36  ;;  %v628_v51 = vmul.f32 %v1081_v34, %v1359_v10  ;;  %v667_v37 = vadd.f32 %v1440_v30, %v647_v42  ;;  %v450_v10 = vadd.f32 %v1447_v57, %v1277_v23 }
 0x26a   :  { %v560_v6 = vpop.xlane.xlu0 %559  ;;  %v452_v34 = vadd.f32 %v1447_v57, %v1287_v29 }
 0x26b   :  { %1088 = vrsqrt.f32 %v600_v58  ;;  %v585_v60 = vmul.f32 0.0078125, %v560_v6  ;;  %v648_v40 = vmul.f32 %v1436_v22, %v628_v51  ;;  %v683_v4 = vmax.f32 %v667_v37, 0.0 }
 0x26c   :  { %v1083_v63 = vpop.eup %1082 }
 0x26d   :  { %v601_v5 = vadd.f32 1e-05, %v585_v60  ;;  %v668_v0 = vadd.f32 %v1440_v30, %v648_v40  ;;  %v629_v43 = vmul.f32 %v1083_v63, %v1364_v14  ;;  %v699_v15 = vadd.f32 %v683_v4, %v450_v10 }
 0x26e   :  { %v562_v9 = vpop.xlane.xlu1 %561 }
 0x26f   :  { %1090 = vrsqrt.f32 %v601_v5  ;;  %v586_v11 = vmul.f32 0.0078125, %v562_v9  ;;  %v684_v46 = vmax.f32 %v668_v0, 0.0  ;;  %v649_v3 = vmul.f32 %v1436_v22, %v629_v43 }
 0x270   :  { %v1085_v12 = vpop.eup %1084 }
 0x271   :  { %v602_v16 = vadd.f32 1e-05, %v586_v11  ;;  %v700_v49 = vadd.f32 %v684_v46, %v451_v7  ;;  %v630_v18 = vmul.f32 %v1085_v12, %v1369_v20  ;;  %v669_v14 = vadd.f32 %v1440_v30, %v649_v3 }
 0x272   :  { %v564_v24 = vpop.xlane.xlu0 %563  ;;  %v453_v20 = vadd.f32 %v1447_v57, %v1292_v32  ;;  %v454_v3 = vadd.f32 %v1447_v57, %v1297_v35 }
 0x273   :  { %1092 = vrsqrt.f32 %v602_v16  ;;  %v587_v23 = vmul.f32 0.0078125, %v564_v24  ;;  %v715_v52 = vpack.c.bf16 %v700_v49, %v699_v15  ;;  %v650_v26 = vmul.f32 %v1436_v22, %v630_v18 }
 0x274   :  { %v1087_v27 = vpop.eup %1086  ;;  %v685_v31 = vmax.f32 %v669_v14, 0.0 }
 0x275   :  { %v603_v55 = vadd.f32 1e-05, %v587_v23  ;;  %995 = vmatprep.mubr.bf16.mxu1 %v715_v52  ;;  %v670_v36 = vadd.f32 %v1440_v30, %v650_v26  ;;  %v631_v42 = vmul.f32 %v1087_v27, %v1374_v25 }
 0x276   :  { %v566_v58 = vpop.xlane.xlu1 %565  ;;  %v701_v40 = vadd.f32 %v685_v31, %v452_v34 }
 0x277   :  { %1094 = vrsqrt.f32 %v603_v55  ;;  %v588_v51 = vmul.f32 0.0078125, %v566_v58  ;;  %v686_v37 = vmax.f32 %v670_v36, 0.0  ;;  %v651_v6 = vmul.f32 %v1436_v22, %v631_v42 }
 0x278   :  { %v1089_v60 = vpop.eup %1088 }
 0x279   :  { %v604_v63 = vadd.f32 1e-05, %v588_v51  ;;  %v702_v4 = vadd.f32 %v686_v37, %v453_v20  ;;  %v632_v5 = vmul.f32 %v1089_v60, %v1379_v33  ;;  %v671_v25 = vadd.f32 %v1440_v30, %v651_v6 }
 0x27a   :  { %v568_v0 = vpop.xlane.xlu0 %567  ;;  %v455_v33 = vadd.f32 %v1447_v57, %v1302_v38  ;;  %v456_v20 = vadd.f32 %v1447_v57, %v1307_v41 }
 0x27b   :  { %1096 = vrsqrt.f32 %v604_v63  ;;  %v589_v29 = vmul.f32 0.0078125, %v568_v0  ;;  %v716_v43 = vpack.c.bf16 %v702_v4, %v701_v40  ;;  %v652_v32 = vmul.f32 %v1436_v22, %v632_v5 }
 0x27c   :  { %v1091_v10 = vpop.eup %1090  ;;  %v687_v7 = vmax.f32 %v671_v25, 0.0 }
 0x27d   :  { %v605_v9 = vadd.f32 1e-05, %v589_v29  ;;  %996 = vmatmul.mubr.bf16.vlgmr.msra.gmra.mxu1 %v716_v43  ;;  %v672_v11 = vadd.f32 %v1440_v30, %v652_v32  ;;  %v633_v46 = vmul.f32 %v1091_v10, %v1384_v45 }
 0x27e   :  { %v570_v12 = vpop.xlane.xlu1 %569  ;;  %v703_v14 = vadd.f32 %v687_v7, %v454_v3 }
 0x27f   :  { %1098 = vrsqrt.f32 %v605_v9  ;;  %v590_v15 = vmul.f32 0.0078125, %v570_v12  ;;  %v688_v16 = vmax.f32 %v672_v11, 0.0  ;;  %v653_v49 = vmul.f32 %v1436_v22, %v633_v46 }
 0x280   :  { %v1093_v18 = vpop.eup %1092  ;;  %v458_v9 = vadd.f32 %v1447_v57, %v1317_v47 }
 0x281   :  { %v606_v24 = vadd.f32 1e-05, %v590_v15  ;;  %v704_v23 = vadd.f32 %v688_v16, %v455_v33  ;;  %v634_v52 = vmul.f32 %v1093_v18, %v1389_v54  ;;  %v673_v45 = vadd.f32 %v1440_v30, %v653_v49 }
 0x282   :  { %v572_v26 = vpop.xlane.xlu0 %571  ;;  %v457_v54 = vadd.f32 %v1447_v57, %v1312_v44 }
 0x283   :  { %1100 = vrsqrt.f32 %v606_v24  ;;  %v591_v35 = vmul.f32 0.0078125, %v572_v26  ;;  %v717_v27 = vpack.c.bf16 %v704_v23, %v703_v14  ;;  %v654_v38 = vmul.f32 %v1436_v22, %v634_v52 }
 0x284   :  { %v1095_v31 = vpop.eup %1094  ;;  %v689_v55 = vmax.f32 %v673_v45, 0.0  ;;  %v460_v45 = vadd.f32 %v1447_v57, %v1327_v53  ;;  %v461_v26 = vadd.f32 %v1447_v57, %v1332_v56 }
 0x285   :  { %v607_v36 = vadd.f32 1e-05, %v591_v35  ;;  %999 = vmatprep.mubr.bf16.mxu1 %v717_v27  ;;  %v674_v42 = vadd.f32 %v1440_v30, %v654_v38  ;;  %v635_v34 = vmul.f32 %v1095_v31, %v1394_v2 }
 0x286   :  { %v574_v58 = vpop.xlane.xlu1 %573  ;;  %v705_v40 = vadd.f32 %v689_v55, %v456_v20 }
 0x287   :  { %1102 = vrsqrt.f32 %v607_v36  ;;  %v592_v51 = vmul.f32 0.0078125, %v574_v58  ;;  %v690_v37 = vmax.f32 %v674_v42, 0.0  ;;  %v655_v6 = vmul.f32 %v1436_v22, %v635_v34 }
 0x288   :  { %v1097_v60 = vpop.eup %1096  ;;  %v463_v58 = vadd.f32 %v1447_v57, %v1342_v62  ;;  %v464_v62 = vadd.f32 %v1447_v57, %v1347_v1 }
 0x289   :  { %v608_v63 = vadd.f32 1e-05, %v592_v51  ;;  %v706_v4 = vadd.f32 %v690_v37, %v457_v54  ;;  %v636_v5 = vmul.f32 %v1097_v60, %v1399_v8  ;;  %v675_v2 = vadd.f32 %v1440_v30, %v655_v6 }
 0x28a   :  { %v576_v25 = vpop.xlane.xlu0 %575  ;;  %v459_v8 = vadd.f32 %v1447_v57, %v1322_v50  ;;  %v462_v54 = vadd.f32 %v1447_v57, %v1337_v59 }
 0x28b   :  { %1104 = vrsqrt.f32 %v608_v63  ;;  %v593_v41 = vmul.f32 0.0078125, %v576_v25  ;;  %v718_v0 = vpack.c.bf16 %v706_v4, %v705_v40  ;;  %v656_v44 = vmul.f32 %v1436_v22, %v636_v5 }
 0x28c   :  { %v1099_v29 = vpop.eup %1098  ;;  %v691_v43 = vmax.f32 %v675_v2, 0.0 }
 0x28d   :  { %v609_v32 = vadd.f32 1e-05, %v593_v41  ;;  %1000 = vmatmul.mubr.bf16.gmra.mxu1 %v718_v0  ;;  %v676_v10 = vadd.f32 %v1440_v30, %v656_v44  ;;  %v637_v7 = vmul.f32 %v1099_v29, %v1404_v13 }
 0x28e   :  { %v578_v11 = vpop.xlane.xlu1 %577  ;;  %v707_v15 = vadd.f32 %v691_v43, %v458_v9 }
 0x28f   :  { %1106 = vrsqrt.f32 %v609_v32  ;;  %v594_v46 = vmul.f32 0.0078125, %v578_v11  ;;  %v692_v3 = vmax.f32 %v676_v10, 0.0  ;;  %v657_v33 = vmul.f32 %v1436_v22, %v637_v7 }
 0x290   :  { %v1101_v12 = vpop.eup %1100 }
 0x291   :  { %v610_v16 = vadd.f32 1e-05, %v594_v46  ;;  %v708_v49 = vadd.f32 %v692_v3, %v459_v8  ;;  %v638_v18 = vmul.f32 %v1101_v12, %v1409_v21  ;;  %v677_v13 = vadd.f32 %v1440_v30, %v657_v33 }
 0x293   :  { %1108 = vrsqrt.f32 %v610_v16  ;;  %v719_v14 = vpack.c.bf16 %v708_v49, %v707_v15  ;;  %v658_v47 = vmul.f32 %v1436_v22, %v638_v18  ;;  %v693_v23 = vmax.f32 %v677_v13, 0.0 }
 0x294   :  { %v1103_v24 = vpop.eup %1102 }
 0x295   :  { %1003 = vmatprep.mubr.bf16.mxu1 %v719_v14  ;;  %v678_v50 = vadd.f32 %v1440_v30, %v658_v47  ;;  %v639_v52 = vmul.f32 %v1103_v24, %v1414_v28  ;;  %v709_v38 = vadd.f32 %v693_v23, %v460_v45 }
 0x297   :  { %v694_v21 = vmax.f32 %v678_v50, 0.0  ;;  %v659_v35 = vmul.f32 %v1436_v22, %v639_v52 }
 0x298   :  { %v1105_v27 = vpop.eup %1104 }
 0x299   :  { %v710_v31 = vadd.f32 %v694_v21, %v461_v26  ;;  %v640_v55 = vmul.f32 %v1105_v27, %v1419_v39  ;;  %v679_v36 = vadd.f32 %v1440_v30, %v659_v35 }
 0x29b   :  { %v720_v42 = vpack.c.bf16 %v710_v31, %v709_v38  ;;  %v660_v34 = vmul.f32 %v1436_v22, %v640_v55  ;;  %v695_v20 = vmax.f32 %v679_v36, 0.0 }
 0x29c   :  { %v1107_v28 = vpop.eup %1106 }
 0x29d   :  { %1004 = vmatmul.mubr.bf16.gmra.mxu1 %v720_v42  ;;  %v680_v53 = vadd.f32 %v1440_v30, %v660_v34  ;;  %v641_v56 = vmul.f32 %v1107_v28, %v1424_v48  ;;  %v711_v6 = vadd.f32 %v695_v20, %v462_v54  ;;  %v423_v48 = vpop.f32.mrf.mxu0 }
 0x29e   :  { %v465_v25 = vadd.f32 %v1447_v57, %v423_v48 }
 0x29f   :  { %v696_v51 = vmax.f32 %v680_v53, 0.0  ;;  %v661_v39 = vmul.f32 %v1436_v22, %v641_v56 }
 0x2a0   :  { %v1109_v37 = vpop.eup %1108 }
 0x2a1   :  { %v712_v60 = vadd.f32 %v696_v51, %v463_v58  ;;  %v642_v40 = vmul.f32 %v1109_v37, %v1429_v61  ;;  %v681_v63 = vadd.f32 %v1440_v30, %v661_v39  ;;  %v741_v61 = vsub.s32 4, %v1269_v17 }
 0x2a3   :  { %v721_v4 = vpack.c.bf16 %v712_v60, %v711_v6  ;;  %v662_v5 = vmul.f32 %v1436_v22, %v642_v40  ;;  %v697_v2 = vmax.f32 %v681_v63, 0.0  ;;  %v742_v43 = vrot.slane %v1272_v19, %v741_v61 }
 0x2a5   :  { %1007 = vmatprep.mubr.bf16.mxu1 %v721_v4  ;;  %v682_v59 = vadd.f32 %v1440_v30, %v662_v5  ;;  %v713_v0 = vadd.f32 %v697_v2, %v464_v62 }
 0x2a7   :  { %v698_v41 = vmax.f32 %v682_v59, 0.0 }
 0x2a9   :  { %v714_v44 = vadd.f32 %v698_v41, %v465_v25 }
 0x2ab   :  { %v722_v29 = vpack.c.bf16 %v714_v44, %v713_v0 }
 0x2ad   :  { %1008 = vmatmul.mubr.bf16.gmra.mxu1 %v722_v29 }
 0x33d   :  { %v997_v22 = vpop.f32.mrf.mxu1 }
 0x33e   :  { %v834_v32 = vadd.f32 %v997_v22, %v742_v43 }
 0x33f   :  { %v825_v10 = vpop.f32.mrf.mxu1 }
 0x340   :  { %890 = vst [vmem:[#allocation10 + $0x10] sm:$0xff] %v834_v32  ;;  %v826_v30 = vadd.f32 %v825_v10, %v742_v43 }
 0x341   :  { %v998_v7 = vpop.f32.mrf.mxu1 }
 0x342   :  { %888 = vst [vmem:[#allocation10] sm:$0xff] %v826_v30  ;;  %v837_v9 = vadd.f32 %v998_v7, %v742_v43 }
 0x343   :  { %v828_v1 = vpop.f32.mrf.mxu1 }
 0x344   :  { %891 = vst [vmem:[#allocation10 + $0x18] sm:$0xff] %v837_v9  ;;  %v829_v57 = vadd.f32 %v828_v1, %v742_v43 }
 0x346   :  { %889 = vst [vmem:[#allocation10 + $0x8] sm:$0xff] %v829_v57 }
 0x34d   :  { %v1001_v8 = vpop.f32.mrf.mxu1 }
 0x34e   :  { %v850_v11 = vadd.f32 %v1001_v8, %v742_v43 }
 0x34f   :  { %v841_v46 = vpop.f32.mrf.mxu1 }
 0x350   :  { %894 = vst [vmem:[#allocation10 + $0x30] sm:$0xff] %v850_v11  ;;  %v842_v3 = vadd.f32 %v841_v46, %v742_v43 }
 0x351   :  { %v1002_v17 = vpop.f32.mrf.mxu1 }
 0x352   :  { %892 = vst [vmem:[#allocation10 + $0x20] sm:$0xff] %v842_v3  ;;  %v853_v19 = vadd.f32 %v1002_v17, %v742_v43 }
 0x353   :  { %v844_v33 = vpop.f32.mrf.mxu1 }
 0x354   :  { %895 = vst [vmem:[#allocation10 + $0x38] sm:$0xff] %v853_v19  ;;  %v845_v12 = vadd.f32 %v844_v33, %v742_v43 }
 0x356   :  { %893 = vst [vmem:[#allocation10 + $0x28] sm:$0xff] %v845_v12 }
 0x35d   :  { %v1005_v15 = vpop.f32.mrf.mxu1 }
 0x35e   :  { %v866_v16 = vadd.f32 %v1005_v15, %v742_v43 }
 0x35f   :  { %v857_v49 = vpop.f32.mrf.mxu1 }
 0x360   :  { %898 = vst [vmem:[#allocation10 + $0x50] sm:$0xff] %v866_v16  ;;  %v858_v18 = vadd.f32 %v857_v49, %v742_v43 }
 0x361   :  { %v1006_v13 = vpop.f32.mrf.mxu1 }
 0x362   :  { %896 = vst [vmem:[#allocation10 + $0x40] sm:$0xff] %v858_v18  ;;  %v869_v14 = vadd.f32 %v1006_v13, %v742_v43 }
 0x363   :  { %v860_v47 = vpop.f32.mrf.mxu1 }
 0x364   :  { %899 = vst [vmem:[#allocation10 + $0x58] sm:$0xff] %v869_v14  ;;  %v861_v24 = vadd.f32 %v860_v47, %v742_v43 }
 0x366   :  { %897 = vst [vmem:[#allocation10 + $0x48] sm:$0xff] %v861_v24 }
 0x36d   :  { %v1009_v50 = vpop.f32.mrf.mxu1 }
 0x36e   :  { %v882_v23 = vadd.f32 %v1009_v50, %v742_v43 }
 0x36f   :  { %v873_v52 = vpop.f32.mrf.mxu1 }
 0x370   :  { %902 = vst [vmem:[#allocation10 + $0x70] sm:$0xff] %v882_v23  ;;  %v874_v45 = vadd.f32 %v873_v52, %v742_v43 }
 0x371   :  { %v1010_v26 = vpop.f32.mrf.mxu1 }
 0x372   :  { %900 = vst [vmem:[#allocation10 + $0x60] sm:$0xff] %v874_v45  ;;  %v885_v21 = vadd.f32 %v1010_v26, %v742_v43 }
 0x373   :  { %v876_v35 = vpop.f32.mrf.mxu1 }
 0x374   :  { %903 = vst [vmem:[#allocation10 + $0x78] sm:$0xff] %v885_v21  ;;  %v877_v27 = vadd.f32 %v876_v35, %v742_v43 }
 0x376   :  { %901 = vst [vmem:[#allocation10 + $0x68] sm:$0xff] %v877_v27 }
 0x377   :  { %1201 = shalt.err (!%p1198_p10)
}
 0x378   :  { %915 = dma.vmem_to_hbm [thread:$0]  %s910_s3, 2048, %s1536_s4, [#allocation4], %s1219_s18, %s1219_s18, %s1220_s19  }
 0x379   :  { %1216 = dma.done.wait [#allocation4], 2048  }
 0x37a   :  { %1217 = vsyncadd [#allocation4], 4294965248 }
 0x37b   :  { %919 = vsyncpa [#allocation3], 1 }
 0x37c   :  { %920 = vsyncpa [#allocation6], 1 }
 0x37d   :  { %921 = vsyncpa [#allocation9], 1 }
 0x37e   :  { %922 = vsyncpa [#allocation4], 1 }

</bundles_post_ra>
